<compile_context>
chip_gen: v5e
topology: v5e:2x2
jax: 0.10.0
libtpu: 0.0.40
codegen_flags: <defaults>
</compile_context>

<pallas_src>
import numpy as np
import jax
import jax.numpy as jnp
from jax.experimental import pallas as pl
from jax.experimental.pallas import tpu as pltpu


def _round_up(x, m):
    return ((x + m - 1) // m) * m


def _choose_tiling(n, tile_cap=4096, split_threshold=2048):
    """Pick (tile_n, n_pad) for the lane (box) axis.

    Small N  -> single lane-dense tile (grid == 1): one pipeline step, lowest
                fixed per-step overhead (the kernel is launch/overhead bound).
    Large N  -> tiles capped at `tile_cap`, sized so the grid has >= 2 steps
                (both TensorCores used on v7x under "parallel" semantics) while
                amortizing the ~0.35 us fixed per-step pipeline overhead.
    """
    n128 = _round_up(max(n, 1), 128)
    if n128 <= split_threshold:
        return n128, n128
    half = _round_up(-(-n128 // 2), 128)
    tile = min(tile_cap, half)
    n_pad = _round_up(n128, tile)
    return tile, n_pad


def _late_fusion_geom_kernel(params_ref,             # SMEM (scalar prefetch)
                             corners_ref, ry_ref,    # VMEM inputs
                             box_ref, misc_ref):     # VMEM outputs
    # corners_ref: (3, 8, T)  box corners, coordinate-major (NaN on padded lanes)
    # ry_ref:      (1, T)     yaw angle per box
    # box_ref:     (3, 8, T)  trans(box)
    # misc_ref:    (8, T)     rows 0-2: trans(center) xyz
    #                         rows 3-5: trans(arrow_end) xyz
    #                         row  6:   keep mask (1.0 / 0.0)
    #                         row  7:   padding (zeros)
    x = corners_ref[0]          # (8, T)
    y = corners_ref[1]
    z = corners_ref[2]
    ry = ry_ref[...]            # (1, T)

    # Flat scalar parameter reads from SMEM.
    r00 = params_ref[0]; r01 = params_ref[1]; r02 = params_ref[2]
    r10 = params_ref[3]; r11 = params_ref[4]; r12 = params_ref[5]
    r20 = params_ref[6]; r21 = params_ref[7]; r22 = params_ref[8]
    tx = params_ref[9]; ty = params_ref[10]; tz = params_ref[11]
    xmin = params_ref[12]; ymin = params_ref[13]
    xmax = params_ref[14]; ymax = params_ref[15]

    # --- trans(box): p' = R @ p + t on every corner (VPU; no MXU) -----------
    bx = r00 * x + r01 * y + r02 * z + tx     # (8, T)
    by = r10 * x + r11 * y + r12 * z + ty
    bz = r20 * x + r21 * y + r22 * z + tz
    box_ref[0] = bx
    box_ref[1] = by
    box_ref[2] = bz

    # --- trans(center) via affine identity: mean of transformed corners -----
    inv8 = jnp.float32(0.125)
    cxt = jnp.sum(bx, axis=0, keepdims=True) * inv8    # (1, T)
    cyt = jnp.sum(by, axis=0, keepdims=True) * inv8
    czt = jnp.sum(bz, axis=0, keepdims=True) * inv8

    # --- trans(arrow_end) = trans(center) + R @ (cos, sin, 0) ---------------
    c = jnp.cos(ry)                                    # EUP
    s = jnp.sin(ry)
    axt = cxt + r00 * c + r01 * s
    ayt = cyt + r10 * c + r11 * s
    azt = czt + r20 * c + r21 * s

    # --- pred_filter: any transformed corner (x, y) inside the rect ---------
    # NaN-padded lanes: every ordered comparison is False -> keep == 0, no
    # explicit lane masking required.
    inside = (bx >= xmin) & (bx <= xmax) & (by >= ymin) & (by <= ymax)   # (8, T)
    keep_f = jnp.any(inside, axis=0, keepdims=True).astype(jnp.float32)  # (1, T)

    # Direct sublane-row stores (vector-store slot; no cross-sublane concat).
    misc_ref[0:1, :] = cxt
    misc_ref[1:2, :] = cyt
    misc_ref[2:3, :] = czt
    misc_ref[3:4, :] = axt
    misc_ref[4:5, :] = ayt
    misc_ref[5:6, :] = azt
    misc_ref[6:7, :] = keep_f
    misc_ref[7:8, :] = jnp.zeros_like(cxt)


def late_fusion_veh_geometry(corners_c8n, ry_n, R, t, xy_range,
                             tile_cap=4096, split_threshold=2048):
    """Box post-processing.  Inputs/outputs are coordinate-major.

    corners_c8n: (3, 8, N) float32 box corners (coordinate-major).
    ry_n:        (N,)      yaw per box.
    Returns (box_c8n, misc_8n, N_pad):
      box_c8n: (3, 8, N_pad) transformed corners.
      misc_8n: (8, N_pad)    rows 0-2 trans(center), 3-5 trans(arrow_end),
                             6 keep mask, 7 zeros.
    Padded lanes (>= N) hold NaN corners and are guaranteed keep == 0; callers
    must keep slicing [:N] / gating on the keep row.

    Boxes from several frames (or both fusion sides) may be concatenated along
    the lane axis and processed in one call — per-box math is independent, and
    batching amortizes the fixed pallas_call launch cost.
    """
    corners = jnp.asarray(corners_c8n, jnp.float32)
    ry = jnp.asarray(ry_n, jnp.float32)
    N = corners.shape[2]

    tile_n, n_pad = _choose_tiling(N, tile_cap, split_threshold)
    grid = n_pad // tile_n

    if n_pad != N:
        # NaN sentinel padding: all rect comparisons on NaN are False, so the
        # keep mask is forced to 0 on padded lanes with no in-kernel masking.
        corners = jnp.pad(corners, ((0, 0), (0, 0), (0, n_pad - N)),
                          constant_values=float("nan"))
        ry = jnp.pad(ry, (0, n_pad - N))
    ry_1n = ry.reshape(1, n_pad)

    params = jnp.concatenate([
        jnp.asarray(R, jnp.float32).reshape(9),
        jnp.asarray(t, jnp.float32).reshape(3),
        jnp.asarray(xy_range, jnp.float32).reshape(4),
    ])                                       # (16,) -> SMEM via scalar prefetch

    box_c8n, misc_8n = pl.pallas_call(
        _late_fusion_geom_kernel,
        out_shape=(
            jax.ShapeDtypeStruct((3, 8, n_pad), jnp.float32),
            jax.ShapeDtypeStruct((8, n_pad), jnp.float32),
        ),
        grid_spec=pltpu.PrefetchScalarGridSpec(
            num_scalar_prefetch=1,
            grid=(grid,),
            in_specs=[
                pl.BlockSpec((3, 8, tile_n), lambda i, p: (0, 0, i)),
                pl.BlockSpec((1, tile_n), lambda i, p: (0, i)),
            ],
            out_specs=(
                pl.BlockSpec((3, 8, tile_n), lambda i, p: (0, 0, i)),
                pl.BlockSpec((8, tile_n), lambda i, p: (0, i)),
            ),
        ),
        compiler_params=pltpu.CompilerParams(
            dimension_semantics=("parallel",)),
    )(params, corners, ry_1n)

    return box_c8n, misc_8n, n_pad


# ---------------------------------------------------------------------------
# Host-side glue mirroring gen_pred_dict / the "remain" compaction in pred().
# ---------------------------------------------------------------------------
def gen_pred_dict(id, timestamp, box, arrow, points, score, label):
    if len(label) == 0:
        score = [-2333]
        label = [-1]
    return {
        "info": id, "timestamp": timestamp, "boxes_3d": box.tolist(),
        "arrows": arrow.tolist(), "scores_3d": score, "labels_3d": label,
        "points": points.tolist(),
    }


def _reference_numpy(corners_n83, ry, R, t, rng):
    box_t = corners_n83 @ R.T + t
    centers = corners_n83.mean(axis=1)
    arrow_end = centers + np.stack(
        [np.cos(ry), np.sin(ry), np.zeros_like(ry)], axis=1)
    center_t = centers @ R.T + t
    arrow_t = arrow_end @ R.T + t
    inside = ((box_t[..., 0] >= rng[0]) & (box_t[..., 0] <= rng[2]) &
              (box_t[..., 1] >= rng[1]) & (box_t[..., 1] <= rng[3]))
    keep = inside.any(axis=1)
    return box_t, center_t, arrow_t, keep


def _make_synthetic_boxes(key, n):
    """Synthetic detector output, built coordinate-major (no HBM transpose)."""
    k_c, k_s, k_ry, k_sc = jax.random.split(key, 4)
    centers_cn = np.asarray(
        jax.random.uniform(k_c, (3, n), minval=-20.0, maxval=20.0), np.float32)
    sizes_cn = np.asarray(
        jax.random.uniform(k_s, (3, n), minval=1.0, maxval=4.0), np.float32)
    ry = np.asarray(
        jax.random.uniform(k_ry, (n,), minval=-np.pi, maxval=np.pi), np.float32)
    scores = np.asarray(
        jax.random.uniform(k_sc, (n,), minval=0.0, maxval=1.0), np.float32)
    labels = np.full((n,), 2, dtype=np.int32)
    unit = np.array([[sx, sy, sz] for sx in (-0.5, 0.5)
                     for sy in (-0.5, 0.5) for sz in (-0.5, 0.5)],
                    dtype=np.float32).T                       # (3, 8)
    corners_c8n = (centers_cn[:, None, :] +
                   unit[:, :, None] * sizes_cn[:, None, :]).astype(np.float32)
    return corners_c8n, ry, scores, labels


def _run_and_check(corners_c8n, ry_np, R, t, xy_range):
    """Run the kernel and validate against the numpy reference."""
    N = corners_c8n.shape[2]
    box_c8n, misc_8n, _ = late_fusion_veh_geometry(corners_c8n, ry_np, R, t, xy_range)
    box_c8n, misc_8n = jax.block_until_ready((box_c8n, misc_8n))
    box_c8n = np.asarray(box_c8n)
    misc_8n = np.asarray(misc_8n)

    center_t = misc_8n[0:3, :N].T            # (N, 3)
    arrow_t = misc_8n[3:6, :N].T             # (N, 3)
    mask = misc_8n[6, :N] > 0.5              # (N,)
    assert not np.any(misc_8n[6, N:] > 0.5), "padded lanes leaked into mask"

    corners_n83 = np.transpose(corners_c8n, (2, 1, 0))
    ref_box, ref_center, ref_arrow, ref_keep = _reference_numpy(
        corners_n83, ry_np, R, t, xy_range)
    box_n83 = np.transpose(box_c8n[:, :, :N], (2, 1, 0))
    assert np.allclose(box_n83, ref_box, atol=1e-3), "box mismatch"
    assert np.allclose(center_t, ref_center, atol=1e-3), "center mismatch"
    assert np.allclose(arrow_t, ref_arrow, atol=1e-3), "arrow mismatch"
    assert np.array_equal(mask, ref_keep), "filter mask mismatch"
    return box_c8n, center_t, arrow_t, mask


if __name__ == "__main__":
    key = jax.random.PRNGKey(0)
    k_small, k_large = jax.random.split(key, 2)

    # Deterministic rigid transform (vehicle-lidar -> world) and the
    # deterministic rectangle used by pred_filter.
    yaw = 0.3
    R = np.array([[np.cos(yaw), -np.sin(yaw), 0.0],
                  [np.sin(yaw),  np.cos(yaw), 0.0],
                  [0.0,          0.0,         1.0]], dtype=np.float32)
    t = np.array([1.5, -2.0, 0.1], dtype=np.float32)
    xy_range = np.array([-15.0, -15.0, 15.0, 15.0], dtype=np.float32)

    # --- case 1: small N (typical per-frame box count), grid == 1 -----------
    N = 8
    corners_c8n, ry_np, scores_np, labels_np = _make_synthetic_boxes(k_small, N)
    box_c8n, center_t, arrow_t, mask = _run_and_check(
        corners_c8n, ry_np, R, t, xy_range)

    # --- remain compaction + pred_dict packaging (host glue, as in pred()) ---
    remain = np.nonzero(mask)[0]
    if len(remain) >= 1:
        # Transpose only the kept subset back to the (N, 8, 3) convention.
        box_out = np.transpose(box_c8n[:, :, remain], (2, 1, 0))
        arrows_out = np.concatenate(
            [center_t[remain][:, None, :], arrow_t[remain][:, None, :]], axis=1)
        scores_out = scores_np[remain]
        labels_out = labels_np[remain]
    else:
        box_out = np.zeros((1, 8, 3))
        arrows_out = np.zeros((1, 2, 3))
        scores_out = np.zeros(1)
        labels_out = np.zeros(1)

    pred_dict = gen_pred_dict(
        id="000000", timestamp=0.0, box=box_out, arrow=arrows_out,
        points=np.array([]), score=scores_out.tolist(),
        label=labels_out.tolist())
    _ = pred_dict  # (would be pickled to disk in the original module)

    # --- case 2: large batched N (many frames concatenated), grid >= 2 ------
    # Exercises the multi-step pipeline path (and v7x dual-core sharding).
    N_big = 2400
    corners_big, ry_big, _, _ = _make_synthetic_boxes(k_large, N_big)
    _run_and_check(corners_big, ry_big, R, t, xy_range)

    print("KERNEL_OK")
</pallas_src>

<mosaic_0001>
module attributes {stable_mosaic.version = 11 : i64} {
  func.func @_late_fusion_geom_kernel(%arg0: i32, %arg1: memref<16xf32, #tpu.memory_space<smem>>, %arg2: memref<3x8x128xf32, #tpu.memory_space<vmem>>, %arg3: memref<1x128xf32, #tpu.memory_space<vmem>>, %arg4: memref<3x8x128xf32, #tpu.memory_space<vmem>>, %arg5: memref<8x128xf32, #tpu.memory_space<vmem>>) attributes {dimension_semantics = [#tpu.dimension_semantics<parallel>], iteration_bounds = array<i64: 1>, scalar_prefetch = 1 : i64, scratch_operands = 0 : i64, tpu.core_type = #tpu.core_type<tc>, window_params = [{transform_indices = @transform_0, window_bounds = array<i64: 3, 8, 128>}, {transform_indices = @transform_1, window_bounds = array<i64: 1, 128>}, {transform_indices = @transform_2, window_bounds = array<i64: 3, 8, 128>}, {transform_indices = @transform_3, window_bounds = array<i64: 8, 128>}]} {
    %c0 = arith.constant 0 : index
    %c0_0 = arith.constant 0 : index
    %c0_1 = arith.constant 0 : index
    %0 = vector.load %arg2[%c0, %c0_0, %c0_1] : memref<3x8x128xf32, #tpu.memory_space<vmem>>, vector<1x8x128xf32>
    %1 = vector.shape_cast %0 : vector<1x8x128xf32> to vector<8x128xf32>
    %c1 = arith.constant 1 : index
    %c0_2 = arith.constant 0 : index
    %c0_3 = arith.constant 0 : index
    %2 = vector.load %arg2[%c1, %c0_2, %c0_3] : memref<3x8x128xf32, #tpu.memory_space<vmem>>, vector<1x8x128xf32>
    %3 = vector.shape_cast %2 : vector<1x8x128xf32> to vector<8x128xf32>
    %c2 = arith.constant 2 : index
    %c0_4 = arith.constant 0 : index
    %c0_5 = arith.constant 0 : index
    %4 = vector.load %arg2[%c2, %c0_4, %c0_5] : memref<3x8x128xf32, #tpu.memory_space<vmem>>, vector<1x8x128xf32>
    %5 = vector.shape_cast %4 : vector<1x8x128xf32> to vector<8x128xf32>
    %c0_6 = arith.constant 0 : index
    %c0_7 = arith.constant 0 : index
    %6 = vector.load %arg3[%c0_6, %c0_7] : memref<1x128xf32, #tpu.memory_space<vmem>>, vector<1x128xf32>
    %c0_8 = arith.constant 0 : index
    %7 = memref.load %arg1[%c0_8] : memref<16xf32, #tpu.memory_space<smem>>
    %c1_9 = arith.constant 1 : index
    %8 = memref.load %arg1[%c1_9] : memref<16xf32, #tpu.memory_space<smem>>
    %c2_10 = arith.constant 2 : index
    %9 = memref.load %arg1[%c2_10] : memref<16xf32, #tpu.memory_space<smem>>
    %c3 = arith.constant 3 : index
    %10 = memref.load %arg1[%c3] : memref<16xf32, #tpu.memory_space<smem>>
    %c4 = arith.constant 4 : index
    %11 = memref.load %arg1[%c4] : memref<16xf32, #tpu.memory_space<smem>>
    %c5 = arith.constant 5 : index
    %12 = memref.load %arg1[%c5] : memref<16xf32, #tpu.memory_space<smem>>
    %c6 = arith.constant 6 : index
    %13 = memref.load %arg1[%c6] : memref<16xf32, #tpu.memory_space<smem>>
    %c7 = arith.constant 7 : index
    %14 = memref.load %arg1[%c7] : memref<16xf32, #tpu.memory_space<smem>>
    %c8 = arith.constant 8 : index
    %15 = memref.load %arg1[%c8] : memref<16xf32, #tpu.memory_space<smem>>
    %c9 = arith.constant 9 : index
    %16 = memref.load %arg1[%c9] : memref<16xf32, #tpu.memory_space<smem>>
    %c10 = arith.constant 10 : index
    %17 = memref.load %arg1[%c10] : memref<16xf32, #tpu.memory_space<smem>>
    %c11 = arith.constant 11 : index
    %18 = memref.load %arg1[%c11] : memref<16xf32, #tpu.memory_space<smem>>
    %c12 = arith.constant 12 : index
    %19 = memref.load %arg1[%c12] : memref<16xf32, #tpu.memory_space<smem>>
    %c13 = arith.constant 13 : index
    %20 = memref.load %arg1[%c13] : memref<16xf32, #tpu.memory_space<smem>>
    %c14 = arith.constant 14 : index
    %21 = memref.load %arg1[%c14] : memref<16xf32, #tpu.memory_space<smem>>
    %c15 = arith.constant 15 : index
    %22 = memref.load %arg1[%c15] : memref<16xf32, #tpu.memory_space<smem>>
    %23 = vector.broadcast %7 : f32 to vector<8x128xf32>
    %24 = arith.mulf %23, %1 : vector<8x128xf32>
    %25 = vector.broadcast %8 : f32 to vector<8x128xf32>
    %26 = arith.mulf %25, %3 : vector<8x128xf32>
    %27 = arith.addf %24, %26 : vector<8x128xf32>
    %28 = vector.broadcast %9 : f32 to vector<8x128xf32>
    %29 = arith.mulf %28, %5 : vector<8x128xf32>
    %30 = arith.addf %27, %29 : vector<8x128xf32>
    %31 = vector.broadcast %16 : f32 to vector<8x128xf32>
    %32 = arith.addf %30, %31 : vector<8x128xf32>
    %33 = vector.broadcast %10 : f32 to vector<8x128xf32>
    %34 = arith.mulf %33, %1 : vector<8x128xf32>
    %35 = vector.broadcast %11 : f32 to vector<8x128xf32>
    %36 = arith.mulf %35, %3 : vector<8x128xf32>
    %37 = arith.addf %34, %36 : vector<8x128xf32>
    %38 = vector.broadcast %12 : f32 to vector<8x128xf32>
    %39 = arith.mulf %38, %5 : vector<8x128xf32>
    %40 = arith.addf %37, %39 : vector<8x128xf32>
    %41 = vector.broadcast %17 : f32 to vector<8x128xf32>
    %42 = arith.addf %40, %41 : vector<8x128xf32>
    %43 = vector.broadcast %13 : f32 to vector<8x128xf32>
    %44 = arith.mulf %43, %1 : vector<8x128xf32>
    %45 = vector.broadcast %14 : f32 to vector<8x128xf32>
    %46 = arith.mulf %45, %3 : vector<8x128xf32>
    %47 = arith.addf %44, %46 : vector<8x128xf32>
    %48 = vector.broadcast %15 : f32 to vector<8x128xf32>
    %49 = arith.mulf %48, %5 : vector<8x128xf32>
    %50 = arith.addf %47, %49 : vector<8x128xf32>
    %51 = vector.broadcast %18 : f32 to vector<8x128xf32>
    %52 = arith.addf %50, %51 : vector<8x128xf32>
    %c0_11 = arith.constant 0 : index
    %c0_12 = arith.constant 0 : index
    %c0_13 = arith.constant 0 : index
    %53 = vector.load %arg4[%c0_11, %c0_12, %c0_13] : memref<3x8x128xf32, #tpu.memory_space<vmem>>, vector<1x8x128xf32>
    %54 = vector.shape_cast %53 : vector<1x8x128xf32> to vector<8x128xf32>
    %55 = vector.shape_cast %32 : vector<8x128xf32> to vector<1x8x128xf32>
    tpu.vector_store %arg4[%c0_11, %c0_12, %c0_13], %55 {strides = array<i32>} : memref<3x8x128xf32, #tpu.memory_space<vmem>>, vector<1x8x128xf32>,
    %c1_14 = arith.constant 1 : index
    %c0_15 = arith.constant 0 : index
    %c0_16 = arith.constant 0 : index
    %56 = vector.load %arg4[%c1_14, %c0_15, %c0_16] : memref<3x8x128xf32, #tpu.memory_space<vmem>>, vector<1x8x128xf32>
    %57 = vector.shape_cast %56 : vector<1x8x128xf32> to vector<8x128xf32>
    %58 = vector.shape_cast %42 : vector<8x128xf32> to vector<1x8x128xf32>
    tpu.vector_store %arg4[%c1_14, %c0_15, %c0_16], %58 {strides = array<i32>} : memref<3x8x128xf32, #tpu.memory_space<vmem>>, vector<1x8x128xf32>,
    %c2_17 = arith.constant 2 : index
    %c0_18 = arith.constant 0 : index
    %c0_19 = arith.constant 0 : index
    %59 = vector.load %arg4[%c2_17, %c0_18, %c0_19] : memref<3x8x128xf32, #tpu.memory_space<vmem>>, vector<1x8x128xf32>
    %60 = vector.shape_cast %59 : vector<1x8x128xf32> to vector<8x128xf32>
    %61 = vector.shape_cast %52 : vector<8x128xf32> to vector<1x8x128xf32>
    tpu.vector_store %arg4[%c2_17, %c0_18, %c0_19], %61 {strides = array<i32>} : memref<3x8x128xf32, #tpu.memory_space<vmem>>, vector<1x8x128xf32>,
    %cst = arith.constant dense<0.000000e+00> : vector<128xf32>
    %62 = vector.multi_reduction <add>, %32, %cst [0] : vector<8x128xf32> to vector<128xf32>
    %63 = vector.shape_cast %62 : vector<128xf32> to vector<1x128xf32>
    %cst_20 = arith.constant 1.250000e-01 : f32
    %64 = vector.broadcast %cst_20 : f32 to vector<1x128xf32>
    %65 = arith.mulf %63, %64 : vector<1x128xf32>
    %cst_21 = arith.constant dense<0.000000e+00> : vector<128xf32>
    %66 = vector.multi_reduction <add>, %42, %cst_21 [0] : vector<8x128xf32> to vector<128xf32>
    %67 = vector.shape_cast %66 : vector<128xf32> to vector<1x128xf32>
    %cst_22 = arith.constant 1.250000e-01 : f32
    %68 = vector.broadcast %cst_22 : f32 to vector<1x128xf32>
    %69 = arith.mulf %67, %68 : vector<1x128xf32>
    %cst_23 = arith.constant dense<0.000000e+00> : vector<128xf32>
    %70 = vector.multi_reduction <add>, %52, %cst_23 [0] : vector<8x128xf32> to vector<128xf32>
    %71 = vector.shape_cast %70 : vector<128xf32> to vector<1x128xf32>
    %cst_24 = arith.constant 1.250000e-01 : f32
    %72 = vector.broadcast %cst_24 : f32 to vector<1x128xf32>
    %73 = arith.mulf %71, %72 : vector<1x128xf32>
    %74 = math.cos %6 : vector<1x128xf32>
    %75 = math.sin %6 : vector<1x128xf32>
    %76 = vector.broadcast %7 : f32 to vector<1x128xf32>
    %77 = arith.mulf %76, %74 : vector<1x128xf32>
    %78 = arith.addf %65, %77 : vector<1x128xf32>
    %79 = vector.broadcast %8 : f32 to vector<1x128xf32>
    %80 = arith.mulf %79, %75 : vector<1x128xf32>
    %81 = arith.addf %78, %80 : vector<1x128xf32>
    %82 = vector.broadcast %10 : f32 to vector<1x128xf32>
    %83 = arith.mulf %82, %74 : vector<1x128xf32>
    %84 = arith.addf %69, %83 : vector<1x128xf32>
    %85 = vector.broadcast %11 : f32 to vector<1x128xf32>
    %86 = arith.mulf %85, %75 : vector<1x128xf32>
    %87 = arith.addf %84, %86 : vector<1x128xf32>
    %88 = vector.broadcast %13 : f32 to vector<1x128xf32>
    %89 = arith.mulf %88, %74 : vector<1x128xf32>
    %90 = arith.addf %73, %89 : vector<1x128xf32>
    %91 = vector.broadcast %14 : f32 to vector<1x128xf32>
    %92 = arith.mulf %91, %75 : vector<1x128xf32>
    %93 = arith.addf %90, %92 : vector<1x128xf32>
    %94 = vector.broadcast %19 : f32 to vector<8x128xf32>
    %95 = arith.cmpf oge, %32, %94 : vector<8x128xf32>
    %96 = vector.broadcast %21 : f32 to vector<8x128xf32>
    %97 = arith.cmpf ole, %32, %96 : vector<8x128xf32>
    %98 = arith.andi %95, %97 : vector<8x128xi1>
    %99 = vector.broadcast %20 : f32 to vector<8x128xf32>
    %100 = arith.cmpf oge, %42, %99 : vector<8x128xf32>
    %101 = arith.andi %98, %100 : vector<8x128xi1>
    %102 = vector.broadcast %22 : f32 to vector<8x128xf32>
    %103 = arith.cmpf ole, %42, %102 : vector<8x128xf32>
    %104 = arith.andi %101, %103 : vector<8x128xi1>
    %cst_25 = arith.constant 1.000000e+00 : f32
    %cst_26 = arith.constant 0.000000e+00 : f32
    %105 = vector.broadcast %cst_25 : f32 to vector<8x128xf32>
    %106 = vector.broadcast %cst_26 : f32 to vector<8x128xf32>
    %107 = arith.select %104, %105, %106 : vector<8x128xi1>, vector<8x128xf32>
    %cst_27 = arith.constant dense<0xFF800000> : vector<128xf32>
    %108 = vector.multi_reduction <maximumf>, %107, %cst_27 [0] : vector<8x128xf32> to vector<128xf32>
    %cst_28 = arith.constant 0.000000e+00 : f32
    %109 = vector.broadcast %cst_28 : f32 to vector<128xf32>
    %110 = arith.cmpf ogt, %108, %109 : vector<128xf32>
    %111 = vector.shape_cast %110 : vector<128xi1> to vector<1x128xi1>
    %112 = arith.extui %111 : vector<1x128xi1> to vector<1x128xi32>
    %113 = arith.sitofp %112 : vector<1x128xi32> to vector<1x128xf32>
    %c0_29 = arith.constant 0 : index
    %c0_30 = arith.constant 0 : index
    %114 = vector.load %arg5[%c0_29, %c0_30] : memref<8x128xf32, #tpu.memory_space<vmem>>, vector<1x128xf32>
    tpu.vector_store %arg5[%c0_29, %c0_30], %65 {strides = array<i32>} : memref<8x128xf32, #tpu.memory_space<vmem>>, vector<1x128xf32>,
    %c1_31 = arith.constant 1 : index
    %c0_32 = arith.constant 0 : index
    %115 = vector.load %arg5[%c1_31, %c0_32] : memref<8x128xf32, #tpu.memory_space<vmem>>, vector<1x128xf32>
    tpu.vector_store %arg5[%c1_31, %c0_32], %69 {strides = array<i32>} : memref<8x128xf32, #tpu.memory_space<vmem>>, vector<1x128xf32>,
    %c2_33 = arith.constant 2 : index
    %c0_34 = arith.constant 0 : index
    %116 = vector.load %arg5[%c2_33, %c0_34] : memref<8x128xf32, #tpu.memory_space<vmem>>, vector<1x128xf32>
    tpu.vector_store %arg5[%c2_33, %c0_34], %73 {strides = array<i32>} : memref<8x128xf32, #tpu.memory_space<vmem>>, vector<1x128xf32>,
    %c3_35 = arith.constant 3 : index
    %c0_36 = arith.constant 0 : index
    %117 = vector.load %arg5[%c3_35, %c0_36] : memref<8x128xf32, #tpu.memory_space<vmem>>, vector<1x128xf32>
    tpu.vector_store %arg5[%c3_35, %c0_36], %81 {strides = array<i32>} : memref<8x128xf32, #tpu.memory_space<vmem>>, vector<1x128xf32>,
    %c4_37 = arith.constant 4 : index
    %c0_38 = arith.constant 0 : index
    %118 = vector.load %arg5[%c4_37, %c0_38] : memref<8x128xf32, #tpu.memory_space<vmem>>, vector<1x128xf32>
    tpu.vector_store %arg5[%c4_37, %c0_38], %87 {strides = array<i32>} : memref<8x128xf32, #tpu.memory_space<vmem>>, vector<1x128xf32>,
    %c5_39 = arith.constant 5 : index
    %c0_40 = arith.constant 0 : index
    %119 = vector.load %arg5[%c5_39, %c0_40] : memref<8x128xf32, #tpu.memory_space<vmem>>, vector<1x128xf32>
    tpu.vector_store %arg5[%c5_39, %c0_40], %93 {strides = array<i32>} : memref<8x128xf32, #tpu.memory_space<vmem>>, vector<1x128xf32>,
    %c6_41 = arith.constant 6 : index
    %c0_42 = arith.constant 0 : index
    %120 = vector.load %arg5[%c6_41, %c0_42] : memref<8x128xf32, #tpu.memory_space<vmem>>, vector<1x128xf32>
    tpu.vector_store %arg5[%c6_41, %c0_42], %113 {strides = array<i32>} : memref<8x128xf32, #tpu.memory_space<vmem>>, vector<1x128xf32>,
    %cst_43 = arith.constant 0.000000e+00 : f32
    %121 = vector.broadcast %cst_43 : f32 to vector<1x128xf32>
    %c7_44 = arith.constant 7 : index
    %c0_45 = arith.constant 0 : index
    %122 = vector.load %arg5[%c7_44, %c0_45] : memref<8x128xf32, #tpu.memory_space<vmem>>, vector<1x128xf32>
    tpu.vector_store %arg5[%c7_44, %c0_45], %121 {strides = array<i32>} : memref<8x128xf32, #tpu.memory_space<vmem>>, vector<1x128xf32>,
    return
  }
  func.func @transform_0(%arg0: i32, %arg1: memref<16xf32, #tpu.memory_space<smem>>) -> (i32, i32, i32) {
    %c0_i32 = arith.constant 0 : i32
    %c0_i32_0 = arith.constant 0 : i32
    %c0_i32_1 = arith.constant 0 : i32
    return %c0_i32, %c0_i32_0, %arg0 : i32, i32, i32
  }
  func.func @transform_1(%arg0: i32, %arg1: memref<16xf32, #tpu.memory_space<smem>>) -> (i32, i32) {
    %c0_i32 = arith.constant 0 : i32
    %c0_i32_0 = arith.constant 0 : i32
    return %c0_i32, %arg0 : i32, i32
  }
  func.func @transform_2(%arg0: i32, %arg1: memref<16xf32, #tpu.memory_space<smem>>) -> (i32, i32, i32) {
    %c0_i32 = arith.constant 0 : i32
    %c0_i32_0 = arith.constant 0 : i32
    %c0_i32_1 = arith.constant 0 : i32
    return %c0_i32, %c0_i32_0, %arg0 : i32, i32, i32
  }
  func.func @transform_3(%arg0: i32, %arg1: memref<16xf32, #tpu.memory_space<smem>>) -> (i32, i32) {
    %c0_i32 = arith.constant 0 : i32
    %c0_i32_0 = arith.constant 0 : i32
    return %c0_i32, %arg0 : i32, i32
  }
}

</mosaic_0001>

<bundles_post_ra>
// kernel: tpu_custom_call.1
= control target key start
LH: loop header
LB: loop body
LE: loop exit
PB: predicated region body
PF: predicated region fallthrough
CT: control target
= control target key end

     0   :  { %s631_s18 = smov [#allocation3]   ;;  %s827_s0 = inlined_call_operand.hbm [shape: f32[16], index: 0, kind: input, shape index: {}]   ;;  %s828_s1 = inlined_call_operand.hbm [shape: f32[3,8,128], index: 1, kind: input, shape index: {}]   ;;  %s829_s2 = inlined_call_operand.vmem [shape: f32[1,128], index: 2, kind: input, shape index: {}]   ;;  %s830_s3 = inlined_call_operand.hbm [shape: f32[3,8,128], index: 3, kind: output, shape index: {0}]   ;;  %s831_s4 = inlined_call_operand.hbm [shape: f32[8,128], index: 4, kind: output, shape index: {1}]  }
   0x1   :  { %s11_s17 = sshll.u32 %s827_s0, 4  ;;  %s12_s17 = int_to_ptr.hbm [resolvable:$true] %s11_s17 }
   0x2   :  { %14 = dma.hbm_to_smem %s12_s17, 16, %s631_s18, [#allocation2] }
   0x3   :  { %623 = dma.done.wait [#allocation2], 16 }
   0x4   :  { %624 = vsyncadd [#allocation2], 4294967280 }
   0x5   :  { %17 = sfence }
   0x6   :  { %18 = vsyncpa [#allocation5], 0 }
   0x7   :  { %19 = vsyncpa [#allocation6], 0 }
   0x8   :  { %20 = vsyncpa [#allocation9], 0  ;;  %s25_s21 = sshll.u32 %s828_s1, 4  ;;  %s632_s22 = smov [#allocation4]   ;;  %s26_s21 = int_to_ptr.hbm [resolvable:$true] %s25_s21 }
   0x9   :  { %s27_s23 = sshll.u32 %s632_s22, 4  ;;  %s633_s24 = smov 128   ;;  %s28_s23 = int_to_ptr.vmem [resolvable:$true] %s27_s23 }
   0xa   :  { %s634_s25 = smov 8  }
   0xb   :  { %33 = dma.hbm_to_vmem [thread:$0]  %s26_s21, 384, %s28_s23, [#allocation5], %s633_s24, %s633_s24, %s634_s25  }
   0xc   :  { %625 = dma.done.wait [#allocation5], 384  }
   0xd   :  { %626 = vsyncadd [#allocation5], 4294966912  ;;  %s679_s0 = sld [smem:[#allocation3]]  ;;  %v40_v0 = vld [vmem:[#allocation4] sm:$0xff]  ;;  %v42_v1 = vld [vmem:[#allocation4 + $0x8] sm:$0xff]  ;;  %s635_s11 = smov [#allocation7]  }
   0xe   :  { %s681_s26 = sld [smem:[#allocation3 + $0x1]]  ;;  %v44_v2 = vld [vmem:[#allocation4 + $0x10] sm:$0xff]  ;;  %v698_v6 = vld [vmem:[%s829_s2] sm:$0x1]  ;;  %s734_s12 = sshll.u32 %s635_s11, 4  ;;  %s473_s12 = int_to_ptr.vmem [resolvable:$true] %s734_s12 }
   0xf   :  { %s504_s1 = sld [smem:[#allocation3 + $0x2]]  ;;  %v121_v10 = vand.u32 2139095040, %v698_v6  ;;  %v118_v13 = vand.u32 2147483647, %v698_v6  ;;  %s474_s15 = sshll.u32 %s830_s3, 4  ;;  %s475_s15 = int_to_ptr.hbm [resolvable:$true] %s474_s15 }
  0x10   :  { %s683_s27 = sld [smem:[#allocation3 + $0x9]]  ;;  %v636_v48 = vmov 683565275   ;;  %v637_v50 = vmov 2475754826   ;;  %s644_s19 = smov [#allocation8]  }
  0x11   :  { %s685_s28 = sld [smem:[#allocation3 + $0x3]]  ;;  %v122_v17 = vshrl.u32 %v121_v10, 23  ;;  %v125_v26 = vand.u32 8388607, %v118_v13  ;;  %v638_v55 = vmov 2102212464  }
  0x12   :  { %s687_s29 = sld [smem:[#allocation3 + $0x4]]  ;;  %v639_v58 = vmov 2131351028   ;;  %s486_s20 = sshll.u32 %s644_s19, 4  ;;  %s487_s20 = int_to_ptr.vmem [resolvable:$true] %s486_s20 }
  0x13   :  { %v62_v3 = vstv %s679_s0  ;;  %s507_s30 = sld [smem:[#allocation3 + $0x5]]  ;;  %v518_v22 = vadd.s32 4294967169, %v122_v17  ;;  %v126_v45 = vor.u32 8388608, %v125_v26  ;;  %s488_s23 = sshll.u32 %s831_s4, 4  ;;  %s489_s23 = int_to_ptr.hbm [resolvable:$true] %s488_s23 }
  0x14   :  { %v63_v4 = vmul.f32 %v62_v3, %v40_v0  ;;  %v64_v5 = vstv %s681_s26  ;;  %s693_s5 = sld [smem:[#allocation3 + $0xa]] }
  0x15   :  { %v65_v7 = vmul.f32 %v64_v5, %v42_v1  ;;  %v67_v8 = vstv %s504_s1  ;;  %s702_s8 = sld [smem:[#allocation3 + $0x6]]  ;;  %v128_v30 = vadd.s32 1, %v518_v22 }
  0x16   :  { %v68_v9 = vmul.f32 %v67_v8, %v44_v2  ;;  %s704_s9 = sld [smem:[#allocation3 + $0x7]]  ;;  %v70_v14 = vstv %s683_s27 }
  0x17   :  { %v66_v11 = vadd.f32 %v65_v7, %v63_v4  ;;  %v72_v12 = vstv %s685_s28  ;;  %s510_s10 = sld [smem:[#allocation3 + $0x8]]  ;;  %vm129_vm0 = vcmp.gt.s32.totalorder %v128_v30, 0 }
  0x18   :  { %v73_v15 = vmul.f32 %v72_v12, %v40_v0  ;;  %v74_v16 = vstv %s687_s29  ;;  %s713_s2 = sld [smem:[#allocation3 + $0xb]]  ;;  %v130_v39 = vsel %vm129_vm0, %v128_v30, 0 }
  0x19   :  { %v69_v18 = vadd.f32 %v68_v9, %v66_v11  ;;  %v75_v19 = vmul.f32 %v74_v16, %v42_v1  ;;  %v77_v20 = vstv %s507_s30  ;;  %v132_v41 = vand.u32 31, %v130_v39  ;;  %s514_s3 = sld [smem:[#allocation3 + $0xc]] }
  0x1a   :  { %v78_v21 = vmul.f32 %v77_v20, %v44_v2  ;;  %v80_v27 = vstv %s693_s5  ;;  %v741_v46 = vshrl.u32 %v130_v39, 5  ;;  %v752_v9 = vshll.u32 %v126_v45, 8  ;;  %s516_s16 = sld [smem:[#allocation3 + $0xe]] }
  0x1b   :  { %v717_v23 = vadd.f32 %v70_v14, %v69_v18  ;;  %v76_v24 = vadd.f32 %v75_v19, %v73_v15  ;;  %v82_v25 = vstv %s702_s8  ;;  %v743_v47 = vsub.s32 32, %v132_v41  ;;  %s515_s17 = sld [smem:[#allocation3 + $0xd]] }
  0x1c   :  { %v83_v28 = vmul.f32 %v82_v25, %v40_v0  ;;  %v84_v29 = vstv %s704_s9  ;;  %v135_v49 = vshll.u32 %v636_v48, %v132_v41  ;;  %v138_v51 = vshll.u32 %v637_v50, %v132_v41  ;;  %s517_s18 = sld [smem:[#allocation3 + $0xf]] }
  0x1d   :  { %92 = vst [vmem:[#allocation7] sm:$0xff] %v717_v23  ;;  %v79_v31 = vadd.f32 %v78_v21, %v76_v24  ;;  %v85_v32 = vmul.f32 %v84_v29, %v42_v1  ;;  %v87_v33 = vstv %s510_s10  ;;  %v97_v34 = vrot.slane %v717_v23, 4 }
  0x1e   :  { %v88_v35 = vmul.f32 %v87_v33, %v44_v2  ;;  %v90_v40 = vstv %s713_s2  ;;  %v144_v56 = vshll.u32 %v638_v55, %v132_v41  ;;  %v136_v57 = vshrl.u32 %v637_v50, %v743_v47 }
  0x1f   :  { %v730_v36 = vadd.f32 %v80_v27, %v79_v31  ;;  %v86_v37 = vadd.f32 %v85_v32, %v83_v28  ;;  %v98_v38 = vadd.f32 %v97_v34, %v717_v23  ;;  %v139_v59 = vshrl.u32 %v639_v58, %v743_v47 }
  0x20   :  { %v141_v60 = vshll.u32 %v639_v58, %v132_v41  ;;  %v142_v61 = vshrl.u32 %v638_v55, %v743_v47  ;;  %v640_v1 = vmov 920167782   ;;  %v137_v4 = vor.u32 %v136_v57, %v135_v49 }
  0x21   :  { %94 = vst [vmem:[#allocation7 + $0x8] sm:$0xff] %v730_v36  ;;  %v89_v42 = vadd.f32 %v88_v35, %v86_v37  ;;  %v99_v43 = vrot.slane %v98_v38, 2  ;;  %v104_v44 = vrot.slane %v730_v36, 4  ;;  %v145_v2 = vshrl.u32 %v640_v1, %v743_v47 }
  0x22   :  { %v140_v7 = vor.u32 %v139_v59, %v138_v51  ;;  %v147_v8 = vshll.u32 %v640_v1, %v132_v41  ;;  %v143_v17 = vor.u32 %v142_v61, %v141_v60  ;;  %v641_v18 = vmov 1326507024  }
  0x23   :  { %v91_v52 = vadd.f32 %v90_v40, %v89_v42  ;;  %v100_v53 = vadd.f32 %v99_v43, %v98_v38  ;;  %v105_v54 = vadd.f32 %v104_v44, %v730_v36  ;;  %v146_v15 = vor.u32 %v145_v2, %v144_v56 }
  0x24   :  { %v148_v19 = vshrl.u32 %v641_v18, %v743_v47  ;;  %vm150_vm1 = vcmp.lt.s32.totalorder %v741_v46, 1  ;;  %vm152_vm2 = vcmp.lt.s32.totalorder %v741_v46, 3  ;;  %vm153_vm3 = vcmp.lt.s32.totalorder %v741_v46, 4 }
  0x25   :  { %96 = vst [vmem:[#allocation7 + $0x10] sm:$0xff] %v91_v52  ;;  %v101_v62 = vrot.slane %v100_v53, 1  ;;  %v106_v63 = vrot.slane %v105_v54, 2  ;;  %v111_v0 = vrot.slane %v91_v52, 4  ;;  %vm151_vm4 = vcmp.lt.s32.totalorder %v741_v46, 2 }
  0x26   :  { %480 = dma.vmem_to_hbm [thread:$0]  %s473_s12, 384, %s475_s15, [#allocation6], %s633_s24, %s633_s24, %s634_s25   ;;  %v149_v24 = vor.u32 %v148_v19, %v147_v8  ;;  %v158_v26 = vsel %vm150_vm1, %v137_v4, %v140_v7  ;;  %v159_v30 = vsel %vm153_vm3, %v146_v15, 920167782  ;;  %v167_v31 = vand.u32 65535, %v752_v9 }
  0x27   :  { %v102_v10 = vadd.f32 %v101_v62, %v100_v53  ;;  %v107_v11 = vadd.f32 %v106_v63, %v105_v54  ;;  %v112_v14 = vadd.f32 %v111_v0, %v91_v52  ;;  %v160_v32 = vsel %vm152_vm2, %v143_v17, %v159_v30 }
  0x28   :  { %v162_v33 = vsel %vm150_vm1, %v140_v7, %v143_v17  ;;  %v163_v34 = vsel %vm153_vm3, %v149_v24, 1326507024  ;;  %v168_v35 = vshrl.u32 %v752_v9, 16  ;;  %v161_v39 = vsel %vm151_vm4, %v158_v26, %v160_v32 }
  0x29   :  { %v760_v20 = vmul.f32 0.125, %v102_v10  ;;  %v108_v21 = vrot.slane %v107_v11, 1  ;;  %v113_v22 = vrot.slane %v112_v14, 2  ;;  %v164_v40 = vsel %vm152_vm2, %v146_v15, %v163_v34 }
  0x2a   :  { %v165_v41 = vsel %vm151_vm4, %v162_v33, %v164_v40  ;;  %v191_v42 = vand.u32 65535, %v161_v39  ;;  %v192_v43 = vshrl.u32 %v161_v39, 16  ;;  %v134_v50 = vshrl.u32 %v636_v48, %v743_v47 }
  0x2b   :  { %460 = vst [vmem:[#allocation8] sm:$0x1] %v760_v20  ;;  %v109_v27 = vadd.f32 %v108_v21, %v107_v11  ;;  %v114_v28 = vadd.f32 %v113_v22, %v112_v14  ;;  %v169_v45 = vand.u32 65535, %v165_v41  ;;  %v170_v49 = vshrl.u32 %v165_v41, 16 }
  0x2c   :  { %v193_v51 = vmul.u32 %v191_v42, %v167_v31  ;;  %v194_v52 = vmul.u32 %v192_v43, %v167_v31  ;;  %v195_v53 = vmul.u32 %v191_v42, %v168_v35  ;;  %v155_v58 = vsel %vm153_vm3, %v143_v17, 2102212464 }
  0x2d   :  { %v777_v37 = vmul.f32 0.125, %v109_v27  ;;  %v115_v38 = vrot.slane %v114_v28, 1  ;;  %v171_v55 = vmul.u32 %v169_v45, %v167_v31  ;;  %v172_v56 = vmul.u32 %v170_v49, %v167_v31 }
  0x2e   :  { %v173_v57 = vmul.u32 %v169_v45, %v168_v35  ;;  %v196_v59 = vmul.u32 %v192_v43, %v168_v35  ;;  %v197_v60 = vshll.u32 %v194_v52, 16  ;;  %v199_v61 = vshll.u32 %v195_v53, 16 }
  0x2f   :  { %461 = vst [vmem:[#allocation8 + $0x1] sm:$0x1] %v777_v37  ;;  %v116_v44 = vadd.f32 %v115_v38, %v114_v28  ;;  %v174_v62 = vmul.u32 %v170_v49, %v168_v35  ;;  %v175_v63 = vshll.u32 %v172_v56, 16  ;;  %v154_v47 = vsel %vm150_vm1, %v134_v50, %v137_v4 }
  0x30   :  { %v177_v0 = vshll.u32 %v173_v57, 16  ;;  %vm201_vm5 = vc.u32 %v193_v51, %v197_v60  ;;  %v203_v48 = vadd.s32 %v197_v60, %v193_v51  ;;  %v156_v1 = vsel %vm152_vm2, %v140_v7, %v155_v58 }
  0x31   :  { %v788_v54 = vmul.f32 0.125, %v116_v44  ;;  %vm179_vm6 = vc.u32 %v171_v55, %v175_v63  ;;  %v181_v2 = vadd.s32 %v175_v63, %v171_v55  ;;  %v642_v8 = vmov 0  }
  0x32   :  { %v202_v10 = vsel %vm201_vm5, 1, %v642_v8  ;;  %v180_v11 = vsel %vm179_vm6, 1, %v642_v8  ;;  %v198_v14 = vshrl.u32 %v194_v52, 16  ;;  %vm205_vm7 = vc.u32 %v203_v48, %v199_v61 }
  0x33   :  { %462 = vst [vmem:[#allocation8 + $0x2] sm:$0x1] %v788_v54  ;;  %v204_v15 = vadd.s32 %v202_v10, %v196_v59  ;;  %v176_v17 = vshrl.u32 %v172_v56, 16  ;;  %v182_v18 = vadd.s32 %v180_v11, %v174_v62  ;;  %vm183_vm8 = vc.u32 %v181_v2, %v177_v0 }
  0x34   :  { %v206_v19 = vsel %vm205_vm7, 1, %v642_v8  ;;  %v184_v21 = vsel %vm183_vm8, 1, %v642_v8  ;;  %v200_v22 = vshrl.u32 %v195_v53, 16  ;;  %v178_v24 = vshrl.u32 %v173_v57, 16 }
  0x35   :  { %v208_v4 = vadd.s32 %v206_v19, %v204_v15  ;;  %v186_v26 = vadd.s32 %v184_v21, %v182_v18  ;;  %v157_v7 = vsel %vm151_vm4, %v154_v47, %v156_v1  ;;  %v207_v30 = vadd.s32 %v203_v48, %v199_v61 }
  0x36   :  { %v211_v33 = vmul.u32 %v752_v9, %v157_v7  ;;  %v439_v44 = vstv %s514_s3  ;;  %v441_v45 = vstv %s516_s16  ;;  %v444_v9 = vstv %s515_s17 }
  0x37   :  { %v209_v27 = vadd.s32 %v208_v4, %v198_v14  ;;  %v187_v28 = vadd.s32 %v186_v26, %v176_v17  ;;  %vm440_vm11 = vcmp.ge.f32.partialorder %v717_v23, %v439_v44  ;;  %vm442_vm12 = vcmp.le.f32.partialorder %v717_v23, %v441_v45 }
  0x38   :  { %vm443_vm13 = vmand %vm440_vm11, %vm442_vm12  ;;  %vm445_vm14 = vcmp.ge.f32.partialorder %v730_v36, %v444_v9  ;;  %v447_v50 = vstv %s517_s18  ;;  %v643_v53 = vmov 0.0   ;;  %vm120_vm3 = vcmp.lt.s32.totalorder %v698_v6, 0 }
  0x39   :  { %v210_v31 = vadd.s32 %v209_v27, %v200_v22  ;;  %v188_v32 = vadd.s32 %v187_v28, %v178_v24  ;;  %vm446_vm15 = vmand %vm443_vm13, %vm445_vm14  ;;  %vm448_vm0 = vcmp.le.f32.partialorder %v730_v36, %v447_v50  ;;  %467 = vst [vmem:[#allocation8 + $0x7] sm:$0x1] %v643_v53  ;;  %vm119_vm5 = vcmp.le.f32.partialorder %v118_v13, 0.7853982 }
  0x3a   :  { %vm449_vm1 = vmand %vm446_vm15, %vm448_vm0  ;;  %vm261_vm12 = vweird.f32 %v698_v6 }
  0x3b   :  { %v214_v34 = vadd.s32 1, %v210_v31  ;;  %vm213_vm9 = vc.u32 %v188_v32, %v207_v30  ;;  %v212_v52 = vadd.s32 %v207_v30, %v188_v32  ;;  %v450_v55 = vsel %vm449_vm1, 1.0, %v643_v53 }
  0x3c   :  { %v451_v57 = vrot.slane %v450_v55, 4 }
  0x3d   :  { %v215_v35 = vsel %vm213_vm9, %v214_v34, %v210_v31 }
  0x3e   :  { %v216_v38 = vadd.s32 %v215_v35, %v211_v33  ;;  %v452_v60 = vmax.f32 %v450_v55, %v451_v57 }
  0x40   :  { %v217_v39 = vadd.s32 536870912, %v216_v38  ;;  %v453_v63 = vrot.slane %v452_v60, 2 }
  0x42   :  { %v218_v40 = vshrl.u32 %v217_v39, 30  ;;  %v454_v48 = vmax.f32 %v452_v60, %v453_v63 }
  0x44   :  { %v219_v41 = vshll.u32 %v218_v40, 30  ;;  %v455_v2 = vrot.slane %v454_v48, 1  ;;  %v242_v14 = vsub.s32 4, %v218_v40 }
  0x46   :  { %v220_v46 = vsub.s32 %v216_v38, %v219_v41  ;;  %v456_v10 = vmax.f32 %v454_v48, %v455_v2  ;;  %v243_v19 = vsel %vm120_vm3, %v242_v14, %v218_v40 }
  0x47   :  { %v245_v4 = vsel %vm119_vm5, 0, %v243_v19 }
  0x48   :  { %vm221_vm10 = vcmp.lt.s32.totalorder %v220_v46, 0  ;;  %v222_v42 = vsub.s32 0, %v220_v46  ;;  %vm457_vm4 = vcmp.gt.f32.partialorder %v456_v10, 0.0  ;;  %v416_v28 = vadd.s32 3, %v245_v4 }
  0x49   :  { %v524_v17 = vsel %vm457_vm4, 1.0, %v643_v53  ;;  %v262_v34 = vand.u32 3, %v245_v4 }
  0x4a   :  { %v223_v43 = vsel %vm221_vm10, %v222_v42, %v220_v46  ;;  %466 = vst [vmem:[#allocation8 + $0x6] sm:$0x1] %v524_v17  ;;  %v417_v13 = vand.u32 3, %v416_v28 }
  0x4b   :  { %v224_v49 = vclz %v223_v43  ;;  %vm267_vm6 = vcmp.eq.s32.totalorder %v262_v34, 2  ;;  %vm263_vm8 = vcmp.lt.s32.totalorder %v262_v34, 2  ;;  %vm264_vm9 = vcmp.eq.s32.totalorder %v262_v34, 0 }
  0x4c   :  { %vm422_vm7 = vcmp.eq.s32.totalorder %v417_v13, 2  ;;  %vm419_vm10 = vcmp.eq.s32.totalorder %v417_v13, 0  ;;  %vm418_vm11 = vcmp.lt.s32.totalorder %v417_v13, 2 }
  0x4d   :  { %v519_v51 = vadd.s32 4294967294, %v224_v49 }
  0x4f   :  { %vm520_vm2 = vcmp.lt.s32.totalorder %v519_v51, 0 }
  0x50   :  { %v227_v56 = vsel %vm520_vm2, 0, %v519_v51 }
  0x51   :  { %v228_v58 = vsub.s32 32, %v227_v56  ;;  %v229_v59 = vshll.u32 %v220_v46, %v227_v56  ;;  %v232_v23 = vsub.s32 4294967266, %v227_v56 }
  0x53   :  { %v230_v61 = vshrl.u32 %v212_v52, %v228_v58  ;;  %v233_v62 = vadd.s32 127, %v232_v23 }
  0x55   :  { %v231_v0 = vor.u32 %v230_v61, %v229_v59  ;;  %v234_v47 = vshll.u32 %v233_v62, 23 }
  0x57   :  { %v235_v1 = vor.u32 4788187, %v234_v47  ;;  %v238_v36 = vcvt.s32.f32 %v231_v0 }
  0x59   :  { %v236_v8 = vand.u32 2147483647, %v235_v1 }
  0x5b   :  { %v239_v11 = vmul.f32 %v238_v36, %v236_v8 }
  0x5d   :  { %v240_v15 = vxor.u32 2147483648, %v239_v11 }
  0x5f   :  { %v241_v18 = vsel %vm120_vm3, %v240_v15, %v239_v11 }
  0x60   :  { %v244_v21 = vsel %vm119_vm5, %v698_v6, %v241_v18 }
  0x61   :  { %v246_v22 = vmul.f32 %v244_v21, %v244_v21 }
  0x63   :  { %v247_v24 = vmul.f32 -0.001358992, %v246_v22  ;;  %v254_v26 = vmul.f32 -0.00019511016, %v246_v22 }
  0x65   :  { %v248_v7 = vadd.f32 0.041655596, %v247_v24  ;;  %v255_v27 = vadd.f32 0.008332121, %v254_v26 }
  0x67   :  { %v249_v30 = vmul.f32 %v248_v7, %v246_v22  ;;  %v256_v31 = vmul.f32 %v255_v27, %v246_v22 }
  0x69   :  { %v250_v32 = vadd.f32 -0.4999988, %v249_v30  ;;  %v257_v33 = vadd.f32 -0.16666654, %v256_v31 }
  0x6b   :  { %v251_v35 = vmul.f32 %v250_v32, %v246_v22  ;;  %v258_v38 = vmul.f32 %v257_v33, %v246_v22 }
  0x6d   :  { %v252_v39 = vadd.f32 1.0, %v251_v35  ;;  %v259_v41 = vadd.f32 1.0, %v258_v38 }
  0x6f   :  { %v260_v40 = vmul.f32 %v259_v41, %v244_v21  ;;  %v268_v46 = vxor.u32 2147483648, %v252_v39 }
  0x71   :  { %v265_v42 = vxor.u32 2147483648, %v260_v40  ;;  %v269_v43 = vsel %vm267_vm6, %v268_v46, %v260_v40  ;;  %v424_v44 = vsel %vm422_vm7, %v268_v46, %v260_v40 }
  0x73   :  { %v266_v45 = vsel %vm264_vm9, %v252_v39, %v265_v42  ;;  %v421_v49 = vsel %vm419_vm10, %v252_v39, %v265_v42 }
  0x74   :  { %v270_v9 = vsel %vm263_vm8, %v266_v45, %v269_v43  ;;  %v425_v50 = vsel %vm418_vm11, %v421_v49, %v424_v44 }
  0x75   :  { %v271_v51 = vsel %vm261_vm12, nan, %v270_v9  ;;  %v426_v52 = vsel %vm261_vm12, nan, %v425_v50 }
  0x76   :  { %v427_v53 = vmul.f32 %v271_v51, %v62_v3  ;;  %v429_v55 = vmul.f32 %v426_v52, %v64_v5  ;;  %v431_v56 = vmul.f32 %v271_v51, %v72_v12  ;;  %v433_v57 = vmul.f32 %v426_v52, %v74_v16 }
  0x77   :  { %v435_v58 = vmul.f32 %v271_v51, %v82_v25  ;;  %v437_v59 = vmul.f32 %v426_v52, %v84_v29 }
  0x78   :  { %v428_v6 = vadd.f32 %v427_v53, %v760_v20  ;;  %v432_v23 = vadd.f32 %v431_v56, %v777_v37 }
  0x79   :  { %v436_v60 = vadd.f32 %v435_v58, %v788_v54 }
  0x7a   :  { %v430_v3 = vadd.f32 %v429_v55, %v428_v6  ;;  %v434_v5 = vadd.f32 %v433_v57, %v432_v23 }
  0x7b   :  { %v438_v12 = vadd.f32 %v437_v59, %v436_v60 }
  0x7c   :  { %463 = vst [vmem:[#allocation8 + $0x3] sm:$0x1] %v430_v3 }
  0x7d   :  { %464 = vst [vmem:[#allocation8 + $0x4] sm:$0x1] %v434_v5 }
  0x7e   :  { %465 = vst [vmem:[#allocation8 + $0x5] sm:$0x1] %v438_v12 }
  0x7f   :  { %491 = dma.vmem_to_hbm [thread:$0]  %s487_s20, 128, %s489_s23, [#allocation9]  }
  0x80   :  { %627 = dma.done.wait [#allocation6], 384  }
  0x81   :  { %628 = vsyncadd [#allocation6], 4294966912 }
  0x82   :  { %629 = dma.done.wait [#allocation9], 128  }
  0x83   :  { %630 = vsyncadd [#allocation9], 4294967168 }
  0x84   :  { %500 = vsyncpa [#allocation5], 1 }
  0x85   :  { %501 = vsyncpa [#allocation6], 1 }
  0x86   :  { %502 = vsyncpa [#allocation9], 1 }

</bundles_post_ra>
